<compile_context>
chip_gen: v5e
topology: v5e:2x2
jax: 0.10.0
libtpu: 0.0.40
codegen_flags: <defaults>
</compile_context>

<pallas_src>
import jax
import jax.numpy as jnp
from jax import lax
from jax.experimental import pallas as pl
from jax.experimental.pallas import tpu as pltpu

IN_FEATURES = 10
OUT_FEATURES = 10
FULL_PRECISION_DTYPE = jnp.float32   # self._orig_param_type
MP_PARAM_DTYPE = jnp.bfloat16        # MixedPrecision(param_dtype=...) compute dtype

# Lane-dense batch-tile ceiling (rows per grid step, multiple of 128).  At 32768 rows the
# double-buffered bf16 input + output tiles are ~4 MiB (+ ~2 MiB f32 accumulator temp):
# safe under v5e's 16 MiB default scoped VMEM and comfortably under v6e/v7x limits.
_MAX_BATCH_TILE = 32 * 1024
# Split into >= 2 grid steps once each step still carries at least this many rows, so
# dimension_semantics=("parallel",) actually feeds both v7x TensorCores.
_MIN_ROWS_PER_STEP = 8 * 1024
# Below this many rows a standalone kernel cannot beat letting XLA fuse the tiny matmul.
_XLA_FALLBACK_MAX_BATCH = 4096


def _linear_kernel(xt_ref, w_ref, ot_ref):
    # xt_ref: (Din, TB)   activations, batch on the 128-lane axis
    # w_ref : (Dout, Din) weight in PyTorch layout (VMEM-resident across the grid)
    # ot_ref: (Dout, TB)  y.T, lane-dense output (unmasked full-width stores)
    acc = lax.dot_general(
        w_ref[...],
        xt_ref[...],
        dimension_numbers=(((1,), (0,)), ((), ())),   # canonical (M,K)x(K,N) MXU form
        preferred_element_type=jnp.float32,           # f32 accumulation
    )
    ot_ref[...] = acc.astype(ot_ref.dtype)


def _pick_batch_tile(batch: int) -> int:
    """Rows (lanes) per grid step: full extent for small batches, else a multiple of 128."""
    if batch > _MAX_BATCH_TILE:
        return _MAX_BATCH_TILE
    if batch >= 2 * _MIN_ROWS_PER_STEP:
        # Aim for (at least) 2 grid steps so v7x's two TensorCores both get a share.
        half = pl.cdiv(batch, 2)
        return pl.cdiv(half, 128) * 128
    # Single block covering the whole batch (a full-extent block dim is always legal,
    # even when it is not a multiple of 128).
    return batch


def linear_mixed_precision_forward(x, weight, *, compute_dtype=MP_PARAM_DTYPE,
                                   force_pallas=False):
    """y = x @ weight.T  (nn.Linear(10, 10, bias=False)) under FSDP mixed precision.

    x:      (B, in_features)            full-precision activations
    weight: (out_features, in_features) full-precision params (PyTorch layout)
    Returns (B, out_features) in `compute_dtype` (the MixedPrecision param dtype),
    accumulated in float32 on the MXU.
    """
    B, Din = x.shape
    Dout, Din_w = weight.shape
    assert Din == Din_w

    if (not force_pallas) and B <= _XLA_FALLBACK_MAX_BATCH:
        # Tiny matmul: leave it to XLA (fuses with producers/consumers; no launch overhead).
        y = jnp.dot(x.astype(compute_dtype), weight.astype(compute_dtype).T,
                    preferred_element_type=jnp.float32)
        return y.astype(compute_dtype)

    # Lane-dense layout plumbing (wrapper side).  The bf16 cast is fused into the transpose
    # pass (read f32 / write bf16 once over x) instead of being a separate convert pass.
    x_t = x.astype(compute_dtype).T        # (Din, B)
    w_c = weight.astype(compute_dtype)     # (Dout, Din)

    tb = _pick_batch_tile(B)
    grid_b = pl.cdiv(B, tb)

    itemsize = jnp.dtype(compute_dtype).itemsize
    cost = pl.CostEstimate(
        flops=2 * B * Din * Dout,
        transcendentals=0,
        bytes_accessed=(B * Din + Dout * Din + B * Dout) * itemsize,
    )

    y_t = pl.pallas_call(
        _linear_kernel,
        out_shape=jax.ShapeDtypeStruct((Dout, B), compute_dtype),
        grid_spec=pltpu.PrefetchScalarGridSpec(
            num_scalar_prefetch=0,
            grid=(grid_b,),
            in_specs=[
                # Activations: batch (lane) tiled; ragged last block is masked by Pallas,
                # so no jnp.pad copy is needed.
                pl.BlockSpec((Din, tb), lambda i: (0, i)),
                # Weight: constant block index -> stays resident in VMEM for the whole grid.
                pl.BlockSpec((Dout, Din_w), lambda i: (0, 0)),
            ],
            out_specs=pl.BlockSpec((Dout, tb), lambda i: (0, i)),
        ),
        compiler_params=pltpu.CompilerParams(
            # Independent batch tiles: shard grid steps across TensorCores (near-2x on v7x).
            dimension_semantics=("parallel",),
        ),
        cost_estimate=cost,
        # TODO(synk): pipeline_mode=pl.Buffered(3) on the activation spec is a possible
        # low-single-digit% follow-up once layout/tile size are locked in (DMA-exposed steps).
    )(x_t, w_c)

    # Back to the module's (B, out_features) layout; XLA fuses this into consumers.
    return y_t.T


def _reference(x, weight, compute_dtype=MP_PARAM_DTYPE):
    # Same mixed-precision semantics: bf16 inputs, f32 accumulation (no output rounding).
    x32 = x.astype(compute_dtype).astype(jnp.float32)
    w32 = weight.astype(compute_dtype).astype(jnp.float32)
    return jnp.dot(x32, w32.T)


if __name__ == "__main__":
    key = jax.random.PRNGKey(0)
    k_x, k_w, k_buf, k_x2 = jax.random.split(key, 4)

    # Small shapes consistent with the module: nn.Linear(10, 10, bias=False).
    batch = 16
    x = jax.random.normal(k_x, (batch, IN_FEATURES), dtype=FULL_PRECISION_DTYPE)
    weight = jax.random.normal(k_w, (OUT_FEATURES, IN_FEATURES), dtype=FULL_PRECISION_DTYPE)

    # Registered buffer (1, 2) — declared float64 in PyTorch; never used in forward compute.
    # TODO(synk): float64 buffers are unsupported under TPU default config; stored as float32.
    buffer = jax.random.normal(k_buf, (1, 2), dtype=jnp.float32)

    # 1) Small-batch run, forced through the Pallas kernel (single full-extent block).
    y = linear_mixed_precision_forward(x, weight, force_pallas=True)
    jax.block_until_ready(y)
    assert y.shape == (batch, OUT_FEATURES)
    assert y.dtype == MP_PARAM_DTYPE
    # bf16 output rounding -> loosened tolerance (intended FSDP mixed-precision semantics).
    assert jnp.allclose(y.astype(jnp.float32), _reference(x, weight), atol=2e-2, rtol=2e-2)

    # 2) Larger batch exercising the lane-dense tiled path (2 grid steps, ragged last block).
    batch2 = 20000
    x2 = jax.random.normal(k_x2, (batch2, IN_FEATURES), dtype=FULL_PRECISION_DTYPE)
    y2 = linear_mixed_precision_forward(x2, weight)
    jax.block_until_ready(y2)
    assert y2.shape == (batch2, OUT_FEATURES)
    assert y2.dtype == MP_PARAM_DTYPE
    assert jnp.allclose(y2.astype(jnp.float32), _reference(x2, weight), atol=2e-2, rtol=2e-2)

    print("KERNEL_OK")
</pallas_src>

<mosaic_0001>
module attributes {stable_mosaic.version = 11 : i64} {
  func.func @_linear_kernel(%arg0: i32, %arg1: memref<10x16xbf16, #tpu.memory_space<vmem>>, %arg2: memref<10x10xbf16, #tpu.memory_space<vmem>>, %arg3: memref<10x16xbf16, #tpu.memory_space<vmem>>) attributes {dimension_semantics = [#tpu.dimension_semantics<parallel>], iteration_bounds = array<i64: 1>, scalar_prefetch = 0 : i64, scratch_operands = 0 : i64, tpu.core_type = #tpu.core_type<tc>, window_params = [{transform_indices = @transform_0, window_bounds = array<i64: 10, 16>}, {pipeline_mode = #tpu.pipeline_mode<synchronous>, transform_indices = @transform_1, window_bounds = array<i64: 10, 10>}, {transform_indices = @transform_2, window_bounds = array<i64: 10, 16>}]} {
    %c0 = arith.constant 0 : index
    %c0_0 = arith.constant 0 : index
    %0 = vector.load %arg2[%c0, %c0_0] : memref<10x10xbf16, #tpu.memory_space<vmem>>, vector<10x10xbf16>
    %c0_1 = arith.constant 0 : index
    %c0_2 = arith.constant 0 : index
    %1 = vector.load %arg1[%c0_1, %c0_2] : memref<10x16xbf16, #tpu.memory_space<vmem>>, vector<10x16xbf16>
    %cst = arith.constant dense<0.000000e+00> : vector<10x16xf32>
    %2 = tpu.matmul %0, %1, %cst {dimension_numbers = #tpu.dot_dimension_numbers<[1], [0], [0], [1], [0, 0, 1, 1], [], []>} : vector<10x10xbf16>, vector<10x16xbf16>, vector<10x16xf32> -> vector<10x16xf32>
    %3 = arith.truncf %2 : vector<10x16xf32> to vector<10x16xbf16>
    %c0_3 = arith.constant 0 : index
    %c0_4 = arith.constant 0 : index
    %4 = vector.load %arg3[%c0_3, %c0_4] : memref<10x16xbf16, #tpu.memory_space<vmem>>, vector<10x16xbf16>
    tpu.vector_store %arg3[%c0_3, %c0_4], %3 {strides = array<i32>} : memref<10x16xbf16, #tpu.memory_space<vmem>>, vector<10x16xbf16>,
    return
  }
  func.func @transform_0(%arg0: i32) -> (i32, i32) {
    %c0_i32 = arith.constant 0 : i32
    %c0_i32_0 = arith.constant 0 : i32
    return %c0_i32, %arg0 : i32, i32
  }
  func.func @transform_1(%arg0: i32) -> (i32, i32) {
    %c0_i32 = arith.constant 0 : i32
    %c0_i32_0 = arith.constant 0 : i32
    %c0_i32_1 = arith.constant 0 : i32
    return %c0_i32, %c0_i32_0 : i32, i32
  }
  func.func @transform_2(%arg0: i32) -> (i32, i32) {
    %c0_i32 = arith.constant 0 : i32
    %c0_i32_0 = arith.constant 0 : i32
    return %c0_i32, %arg0 : i32, i32
  }
}

</mosaic_0001>

<bundles_post_ra>
// kernel: tpu_custom_call.1
= control target key start
LH: loop header
LB: loop body
LE: loop exit
PB: predicated region body
PF: predicated region fallthrough
CT: control target
= control target key end

     0   :  { %7 = vsyncpa [#allocation3], 0  ;;  %s239_s0 = inlined_call_operand.hbm [shape: bf16[10,16], index: 0, kind: input, shape index: {}]   ;;  %s240_s1 = inlined_call_operand.hbm [shape: bf16[10,10], index: 1, kind: input, shape index: {}]   ;;  %s241_s2 = inlined_call_operand.hbm [shape: bf16[10,16], index: 2, kind: output, shape index: {}]  }
   0x1   :  { %8 = vsyncpa [#allocation6], 0 }
   0x2   :  { %9 = vsyncpa [#allocation4], 0  ;;  %s14_s11 = sshll.u32 %s239_s0, 4  ;;  %s201_s12 = smov [#allocation2]   ;;  %s15_s11 = int_to_ptr.hbm [resolvable:$true] %s14_s11 }
   0x3   :  { %s16_s13 = sshll.u32 %s201_s12, 4  ;;  %s27_s16 = sshll.u32 %s240_s1, 4  ;;  %s17_s13 = int_to_ptr.vmem [resolvable:$true] %s16_s13  ;;  %s28_s16 = int_to_ptr.hbm [resolvable:$true] %s27_s16 }
   0x4   :  { %s202_s17 = smov 64   ;;  %s203_s18 = smov 4  }
   0x5   :  { %22 = dma.hbm_to_vmem [thread:$0]  %s15_s11, 128, %s17_s13, [#allocation3], %s202_s17, %s202_s17, %s203_s18  }
   0x6   :  { %s204_s19 = smov [#allocation5]  }
   0x7   :  { %s29_s20 = sshll.u32 %s204_s19, 4  ;;  %s30_s20 = int_to_ptr.vmem [resolvable:$true] %s29_s20 }
   0x8   :  { %35 = dma.hbm_to_vmem [thread:$0]  %s28_s16, 128, %s30_s20, [#allocation6], %s202_s17, %s202_s17, %s203_s18  }
   0x9   :  { %195 = dma.done.wait [#allocation3], 128  }
   0xa   :  { %196 = vsyncadd [#allocation3], 4294967168 }
   0xb   :  { %197 = dma.done.wait [#allocation6], 128  }
   0xc   :  { %198 = vsyncadd [#allocation6], 4294967168  ;;  %vm63_vm0 = vcmask 1044480   ;;  %v113_v0 = vld [vmem:[#allocation2] sm:$0xf]  ;;  %vm59_vm1 = vcmask 80896  }
   0xd   :  { %v117_v1 = vld [vmem:[#allocation2] sm:$0x10]  ;;  %v109_v2 = vld [vmem:[#allocation5] sm:$0xf]  ;;  %v116_v4 = vld [vmem:[#allocation5] sm:$0x10] }
   0xe   :  { %v114_v3 = vor.u32 %v117_v1, %v113_v0  ;;  %v110_v6 = vor.u32 %v116_v4, %v109_v2  ;;  %vm83_vm2 = vcmask 125952   ;;  %s205_s0 = smov [#allocation7]   ;;  %s93_s23 = sshll.u32 %s241_s2, 4  ;;  %vm85_vm3 = vcmask 122880   ;;  %s94_s23 = int_to_ptr.hbm [resolvable:$true] %s93_s23 }
   0xf   :  { %s91_s1 = sshll.u32 %s205_s0, 4  ;;  %s92_s1 = int_to_ptr.vmem [resolvable:$true] %s91_s1 }
  0x10   :  { %v65_v5 = vsel %vm63_vm0, %v114_v3, 0 }
  0x11   :  { %74 = vmatpush.bf16.msra.mxu0 %v65_v5 }
  0x14   :  { %115 = vmatmul.msk.bf16.vlgmr.msra.gmra.mxu0 %vm59_vm1, %v110_v6 }
  0x91   :  { %v76_v7 = vpop.f32.mrf.mxu0 }
  0x92   :  { %v81_v8 = vpack.c.bf16 %v76_v7, %v76_v7 }
  0x94   :  { %84 = vst.msk [vmem:[#allocation7] sm:$0xf] %vm83_vm2, %v81_v8 }
  0x99   :  { %v78_v9 = vpop.f32.mrf.mxu0 }
  0x9a   :  { %v82_v10 = vpack.c.bf16 %v78_v9, %v78_v9 }
  0x9c   :  { %86 = vst.msk [vmem:[#allocation7 + $0x4] sm:$0x1] %vm85_vm3, %v82_v10 }
  0x9d   :  { %99 = dma.vmem_to_hbm [thread:$0]  %s92_s1, 128, %s94_s23, [#allocation4], %s202_s17, %s202_s17, %s203_s18  }
  0x9e   :  { %199 = dma.done.wait [#allocation4], 128  }
  0x9f   :  { %200 = vsyncadd [#allocation4], 4294967168 }
  0xa0   :  { %104 = vsyncpa [#allocation3], 1 }
  0xa1   :  { %105 = vsyncpa [#allocation6], 1 }
  0xa2   :  { %106 = vsyncpa [#allocation4], 1 }

</bundles_post_ra>
